<compile_context>
chip_gen: v5e
topology: v5e:2x2
jax: 0.10.0
libtpu: 0.0.40
codegen_flags: <defaults>
</compile_context>

<pallas_src>
import functools
import math

import jax
import jax.numpy as jnp
from jax.experimental import pallas as pl
from jax.experimental.pallas import tpu as pltpu

_LANE = 128
_MAX_TM = 256
_BN_EPS = 1e-5

_PARALLEL = pltpu.CompilerParams(dimension_semantics=("parallel",))
_ARBITRARY = pltpu.CompilerParams(dimension_semantics=("arbitrary",))


# ----------------------------------------------------------------------------
# helpers
# ----------------------------------------------------------------------------
def _round_up(x, m):
    return ((x + m - 1) // m) * m


def _cpad(c):
    return _round_up(c, _LANE)


def _pick_tm(m):
    """Largest power-of-two row tile <= _MAX_TM that divides m (else one full block)."""
    if m % 8 != 0:
        return m          # tiny 1x1-spatial tensors: single full block (allowed)
    tm = 8
    while tm * 2 <= _MAX_TM and m % (tm * 2) == 0:
        tm *= 2
    return tm


def _row_spec(tm, c):
    return pl.BlockSpec((tm, c), lambda i: (i, 0))


def _rep_spec(r, c):
    return pl.BlockSpec((r, c), lambda i: (0, 0))


# ----------------------------------------------------------------------------
# kernel bodies
# ----------------------------------------------------------------------------
def _stats_rows(y):
    """(8, C) slab: row0 = per-channel sum, row1 = per-channel sum of squares."""
    s = jnp.sum(y, axis=0, keepdims=True)
    sq = jnp.sum(y * y, axis=0, keepdims=True)
    return jnp.concatenate([s, sq, jnp.zeros((6, y.shape[1]), jnp.float32)], axis=0)


def _mm_kernel(pre_affine, with_res, with_stats):
    def kernel(*refs):
        i = 0
        x_ref = refs[i]; i += 1
        if pre_affine:
            s_ref, t_ref = refs[i], refs[i + 1]; i += 2
        w_ref, b_ref = refs[i], refs[i + 1]; i += 2
        r_ref = None
        if with_res:
            r_ref = refs[i]; i += 1
        o_ref = refs[i]; i += 1
        st_ref = refs[i] if with_stats else None

        if pre_affine:
            xf = x_ref[...].astype(jnp.float32)
            xf = jnp.maximum(xf * s_ref[...] + t_ref[...], 0.0)
            xb = xf.astype(jnp.bfloat16)
        else:
            xb = x_ref[...]
        acc = jnp.dot(xb, w_ref[...], preferred_element_type=jnp.float32)
        acc = acc + b_ref[...]
        if with_res:
            acc = acc + r_ref[...].astype(jnp.float32)
        o_ref[...] = acc.astype(o_ref.dtype)
        if with_stats:
            st_ref[...] = _stats_rows(acc)
    return kernel


def _conv3_kernel(x_ref, s_ref, t_ref, w_ref, b_ref, o_ref, st_ref, xr_ref,
                  *, H, W, M, PAD):
    # x_ref : (M, Cin) bf16, flattened (n, y, x) activation (pre-BN).
    # xr_ref: (PAD + M + PAD, Cin) bf16 VMEM scratch holding ReLU(BN(x)) once,
    #         with zeroed halo rows so the 9 shifted row slices of a padding=1
    #         3x3 conv stay in bounds.  Out-of-image contributions are masked
    #         per tap (only on the taps that can cross an image border).
    cin = xr_ref.shape[1]
    cout = o_ref.shape[-1]

    # apply BN affine + ReLU exactly once, zero the halo rows.
    xr_ref[0:PAD, :] = jnp.zeros((PAD, cin), jnp.bfloat16)
    xr_ref[PAD + M:PAD + M + PAD, :] = jnp.zeros((PAD, cin), jnp.bfloat16)
    xf = x_ref[...].astype(jnp.float32)
    xr_ref[PAD:PAD + M, :] = jnp.maximum(xf * s_ref[...] + t_ref[...],
                                         0.0).astype(jnp.bfloat16)

    rows = jax.lax.broadcasted_iota(jnp.int32, (M, 1), 0)
    xcol = rows % W
    yrow = (rows // W) % H
    y_ok = {d: (yrow + d >= 0) & (yrow + d < H) for d in (-1, 1)}
    x_ok = {d: (xcol + d >= 0) & (xcol + d < W) for d in (-1, 1)}

    acc = jnp.zeros((M, cout), jnp.float32)
    ti = 0
    for dy in (-1, 0, 1):
        for dx in (-1, 0, 1):
            off = dy * W + dx
            sl = xr_ref[PAD + off:PAD + off + M, :]
            if dy != 0 and dx != 0:
                valid = y_ok[dy] & x_ok[dx]
            elif dy != 0:
                valid = y_ok[dy]
            elif dx != 0:
                valid = x_ok[dx]
            else:
                valid = None
            if valid is not None:
                sl = jnp.where(valid, sl, jnp.zeros_like(sl))
            acc = acc + jnp.dot(sl, w_ref[ti], preferred_element_type=jnp.float32)
            ti += 1
    acc = acc + b_ref[...]
    o_ref[...] = acc.astype(o_ref.dtype)
    st_ref[...] = _stats_rows(acc)


def _affine_kernel(with_stats):
    if with_stats:
        def kernel(x_ref, s_ref, t_ref, o_ref, st_ref):
            y = jnp.maximum(x_ref[...].astype(jnp.float32) * s_ref[...] + t_ref[...], 0.0)
            o_ref[...] = y.astype(o_ref.dtype)
            st_ref[...] = _stats_rows(y)
    else:
        def kernel(x_ref, s_ref, t_ref, o_ref):
            y = jnp.maximum(x_ref[...].astype(jnp.float32) * s_ref[...] + t_ref[...], 0.0)
            o_ref[...] = y.astype(o_ref.dtype)
    return kernel


def _pool_kernel(a_ref, b_ref, c_ref, d_ref, o_ref, st_ref):
    m = jnp.maximum(jnp.maximum(a_ref[...], b_ref[...]),
                    jnp.maximum(c_ref[...], d_ref[...]))
    o_ref[...] = m
    st_ref[...] = _stats_rows(m.astype(jnp.float32))


def _add2_kernel(a_ref, b_ref, o_ref, st_ref):
    y = a_ref[...].astype(jnp.float32) + b_ref[...].astype(jnp.float32)
    o_ref[...] = y.astype(o_ref.dtype)
    st_ref[...] = _stats_rows(y)


def _add3_kernel(a_ref, b_ref, c_ref, o_ref):
    o_ref[...] = (a_ref[...].astype(jnp.float32) + b_ref[...].astype(jnp.float32)
                  + c_ref[...].astype(jnp.float32))


def _merge_kernel(x_ref, y1_ref, w1_ref, y2_ref, w2_ref,
                  hm_ref, wh_ref, mk_ref, wm_ref, o_ref, st_ref):
    acc = x_ref[...].astype(jnp.float32)
    acc = acc + jnp.dot(y1_ref[...], w1_ref[...], preferred_element_type=jnp.float32)
    acc = acc + jnp.dot(y2_ref[...], w2_ref[...], preferred_element_type=jnp.float32)
    acc = acc + jnp.dot(hm_ref[...], wh_ref[...], preferred_element_type=jnp.float32)
    acc = acc + jnp.dot(mk_ref[...], wm_ref[...], preferred_element_type=jnp.float32)
    o_ref[...] = acc.astype(o_ref.dtype)
    st_ref[...] = _stats_rows(acc)


# ----------------------------------------------------------------------------
# pallas_call builders (cached per static shape/config)
# ----------------------------------------------------------------------------
@functools.lru_cache(maxsize=None)
def _build_mm(m, k, n, pre_affine, with_res, with_stats):
    tm = _pick_tm(m)
    nt = m // tm
    in_specs = [_row_spec(tm, k)]
    if pre_affine:
        in_specs += [_rep_spec(1, k), _rep_spec(1, k)]
    in_specs += [_rep_spec(k, n), _rep_spec(1, n)]
    if with_res:
        in_specs.append(_row_spec(tm, n))
    out_specs = [_row_spec(tm, n)]
    out_shape = [jax.ShapeDtypeStruct((m, n), jnp.bfloat16)]
    if with_stats:
        out_specs.append(_row_spec(8, n))
        out_shape.append(jax.ShapeDtypeStruct((nt * 8, n), jnp.float32))
    return pl.pallas_call(
        _mm_kernel(pre_affine, with_res, with_stats),
        grid=(nt,),
        in_specs=in_specs,
        out_specs=tuple(out_specs),
        out_shape=tuple(out_shape),
        compiler_params=_PARALLEL,
    ), nt


@functools.lru_cache(maxsize=None)
def _build_conv3(m, cin, cout, h, w):
    pad = _round_up(w + 1, 8)          # halo rows, kept 8-aligned for sublane-aligned stores
    kern = functools.partial(_conv3_kernel, H=h, W=w, M=m, PAD=pad)
    return pl.pallas_call(
        kern,
        grid=(1,),
        in_specs=[
            pl.BlockSpec((m, cin), lambda i: (0, 0)),
            pl.BlockSpec((1, cin), lambda i: (0, 0)),
            pl.BlockSpec((1, cin), lambda i: (0, 0)),
            pl.BlockSpec((9, cin, cout), lambda i: (0, 0, 0)),
            pl.BlockSpec((1, cout), lambda i: (0, 0)),
        ],
        out_specs=(
            pl.BlockSpec((m, cout), lambda i: (0, 0)),
            pl.BlockSpec((8, cout), lambda i: (0, 0)),
        ),
        out_shape=(
            jax.ShapeDtypeStruct((m, cout), jnp.bfloat16),
            jax.ShapeDtypeStruct((8, cout), jnp.float32),
        ),
        scratch_shapes=[pltpu.VMEM((m + 2 * pad, cin), jnp.bfloat16)],
        compiler_params=_ARBITRARY,
    )


@functools.lru_cache(maxsize=None)
def _build_affine(m, cp, with_stats):
    tm = _pick_tm(m)
    nt = m // tm
    out_specs = [_row_spec(tm, cp)]
    out_shape = [jax.ShapeDtypeStruct((m, cp), jnp.bfloat16)]
    if with_stats:
        out_specs.append(_row_spec(8, cp))
        out_shape.append(jax.ShapeDtypeStruct((nt * 8, cp), jnp.float32))
    return pl.pallas_call(
        _affine_kernel(with_stats),
        grid=(nt,),
        in_specs=[_row_spec(tm, cp), _rep_spec(1, cp), _rep_spec(1, cp)],
        out_specs=tuple(out_specs),
        out_shape=tuple(out_shape),
        compiler_params=_PARALLEL,
    ), nt


@functools.lru_cache(maxsize=None)
def _build_pool(m, cp):
    tm = _pick_tm(m)
    nt = m // tm
    return pl.pallas_call(
        _pool_kernel,
        grid=(nt,),
        in_specs=[_row_spec(tm, cp)] * 4,
        out_specs=(_row_spec(tm, cp), _row_spec(8, cp)),
        out_shape=(jax.ShapeDtypeStruct((m, cp), jnp.bfloat16),
                   jax.ShapeDtypeStruct((nt * 8, cp), jnp.float32)),
        compiler_params=_PARALLEL,
    ), nt


@functools.lru_cache(maxsize=None)
def _build_add2(m, cp):
    tm = _pick_tm(m)
    nt = m // tm
    return pl.pallas_call(
        _add2_kernel,
        grid=(nt,),
        in_specs=[_row_spec(tm, cp)] * 2,
        out_specs=(_row_spec(tm, cp), _row_spec(8, cp)),
        out_shape=(jax.ShapeDtypeStruct((m, cp), jnp.bfloat16),
                   jax.ShapeDtypeStruct((nt * 8, cp), jnp.float32)),
        compiler_params=_PARALLEL,
    ), nt


@functools.lru_cache(maxsize=None)
def _build_add3(m, cp):
    tm = _pick_tm(m)
    nt = m // tm
    return pl.pallas_call(
        _add3_kernel,
        grid=(nt,),
        in_specs=[_row_spec(tm, cp)] * 3,
        out_specs=(_row_spec(tm, cp),),
        out_shape=(jax.ShapeDtypeStruct((m, cp), jnp.float32),),
        compiler_params=_PARALLEL,
    )


@functools.lru_cache(maxsize=None)
def _build_merge(m, cp, k1, k2, k3, k4):
    tm = _pick_tm(m)
    nt = m // tm
    in_specs = [_row_spec(tm, cp),
                _row_spec(tm, k1), _rep_spec(k1, cp),
                _row_spec(tm, k2), _rep_spec(k2, cp),
                _row_spec(tm, k3), _rep_spec(k3, cp),
                _row_spec(tm, k4), _rep_spec(k4, cp)]
    return pl.pallas_call(
        _merge_kernel,
        grid=(nt,),
        in_specs=in_specs,
        out_specs=(_row_spec(tm, cp), _row_spec(8, cp)),
        out_shape=(jax.ShapeDtypeStruct((m, cp), jnp.bfloat16),
                   jax.ShapeDtypeStruct((nt * 8, cp), jnp.float32)),
        compiler_params=_PARALLEL,
    ), nt


# ----------------------------------------------------------------------------
# jitted wrappers
# ----------------------------------------------------------------------------
def _bn_scale_shift(stats, gamma, beta, count, cp):
    # training-mode BN: batch mean / biased variance, eps=1e-5, f32 math.
    c = gamma.shape[0]
    mean = stats[0, :c] / count
    var = stats[1, :c] / count - mean * mean
    inv = gamma * jax.lax.rsqrt(jnp.maximum(var, 0.0) + _BN_EPS)
    scale = jnp.pad(inv, (0, cp - c)).reshape(1, cp)
    shift = jnp.pad(beta - mean * inv, (0, cp - c)).reshape(1, cp)
    return scale, shift


def _reduce_stats(st_raw, nt, n):
    return st_raw.reshape(nt, 8, n)[:, :2, :].sum(axis=0)


@functools.partial(jax.jit, static_argnames=("pre_affine", "with_res", "with_stats"))
def _mm_call(x, stats_in, gamma, beta, w, b, res, *,
             pre_affine, with_res, with_stats):
    m, k = x.shape
    n = w.shape[1]
    args = [x]
    if pre_affine:
        scale, shift = _bn_scale_shift(stats_in, gamma, beta, m, k)
        args += [scale, shift]
    args += [w, b]
    if with_res:
        args.append(res)
    call, nt = _build_mm(m, k, n, pre_affine, with_res, with_stats)
    outs = call(*args)
    st = _reduce_stats(outs[1], nt, n) if with_stats else None
    return outs[0], st


@functools.partial(jax.jit, static_argnames=("h", "w"))
def _conv3_call(x, stats_in, gamma, beta, w9, b, *, h, w):
    m, cin = x.shape
    cout = w9.shape[2]
    scale, shift = _bn_scale_shift(stats_in, gamma, beta, m, cin)
    out, st_raw = _build_conv3(m, cin, cout, h, w)(x, scale, shift, w9, b)
    return out, st_raw[:2, :]


@functools.partial(jax.jit, static_argnames=("with_stats",))
def _affine_call(x, stats_in, gamma, beta, *, with_stats):
    m, cp = x.shape
    scale, shift = _bn_scale_shift(stats_in, gamma, beta, m, cp)
    call, nt = _build_affine(m, cp, with_stats)
    outs = call(x, scale, shift)
    st = _reduce_stats(outs[1], nt, cp) if with_stats else None
    return outs[0], st


@functools.partial(jax.jit, static_argnames=("n", "h", "w"))
def _pool_call(x, *, n, h, w):
    cp = x.shape[1]
    ho, wo = h // 2, w // 2
    x4 = x.reshape(n, h, w, cp)
    quads = [x4[:, dy::2, dx::2, :].reshape(n * ho * wo, cp)
             for dy in (0, 1) for dx in (0, 1)]
    call, nt = _build_pool(n * ho * wo, cp)
    out, st_raw = call(*quads)
    return out, _reduce_stats(st_raw, nt, cp)


@functools.partial(jax.jit, static_argnames=("n", "h", "w"))
def _upadd_call(up, low, *, n, h, w):
    cp = up.shape[1]
    l4 = low.reshape(n, h // 2, w // 2, cp)
    l4 = jnp.repeat(jnp.repeat(l4, 2, axis=1), 2, axis=2)   # nearest-neighbour x2
    lo = l4.reshape(n * h * w, cp)
    call, nt = _build_add2(n * h * w, cp)
    out, st_raw = call(up, lo)
    return out, _reduce_stats(st_raw, nt, cp)


@jax.jit
def _add3_call(a, b, c):
    m, cp = a.shape
    return _build_add3(m, cp)(a, b, c)[0]


@jax.jit
def _merge_call(x, y1, w1, y2, w2, hm, wh, mk, wm):
    m, cp = x.shape
    call, nt = _build_merge(m, cp, w1.shape[0], w2.shape[0], wh.shape[0], wm.shape[0])
    out, st_raw = call(x, y1, w1, y2, w2, hm, wh, mk, wm)
    return out, _reduce_stats(st_raw, nt, cp)


@jax.jit
def _stem_call(x_nchw, w, b):
    # 7x7 / stride 2 / pad 3 stem conv: im2col in XLA glue (3 in-channels, one-off),
    # then the fused matmul+bias+stats kernel.
    x = jnp.transpose(x_nchw, (0, 2, 3, 1)).astype(jnp.float32)
    n, hin, win, c = x.shape
    xp = jnp.pad(x, ((0, 0), (3, 3), (3, 3), (0, 0)))
    ho = (hin + 6 - 7) // 2 + 1
    wo = (win + 6 - 7) // 2 + 1
    cols = []
    for dy in range(7):
        for dx in range(7):
            cols.append(xp[:, dy:dy + (ho - 1) * 2 + 1:2,
                           dx:dx + (wo - 1) * 2 + 1:2, :])
    patches = jnp.concatenate(cols, axis=-1).reshape(n * ho * wo, 49 * c)
    kp = w.shape[0]
    xm = jnp.pad(patches, ((0, 0), (0, kp - 49 * c))).astype(jnp.bfloat16)
    nout = w.shape[1]
    call, nt = _build_mm(n * ho * wo, kp, nout, False, False, True)
    out, st_raw = call(xm, w, b)
    return out, _reduce_stats(st_raw, nt, nout)


@functools.partial(jax.jit, static_argnames=("n", "h", "w", "c"))
def _to_nchw_jit(d, *, n, h, w, c):
    x = d[:, :c].astype(jnp.float32).reshape(n, h, w, c)
    return jnp.transpose(x, (0, 3, 1, 2))


# ----------------------------------------------------------------------------
# parameter init (deterministic, synthetic) + kernel-ready layout
# ----------------------------------------------------------------------------
class _Init:
    def __init__(self, seed=0):
        self._key = jax.random.PRNGKey(seed)

    def _next(self):
        self._key, k = jax.random.split(self._key)
        return k

    def conv(self, out_ch, in_ch, kh, kw, bias=True):
        fan_in = in_ch * kh * kw
        w = jax.random.normal(self._next(), (out_ch, in_ch, kh, kw), jnp.float32)
        w = w * (1.0 / math.sqrt(fan_in))
        b = (0.01 * jax.random.normal(self._next(), (out_ch,), jnp.float32)
             if bias else None)
        return {"w": w, "b": b}

    def bn(self, ch):
        # PyTorch default BN init: weight=1, bias=0
        return {"gamma": jnp.ones((ch,), jnp.float32),
                "beta": jnp.zeros((ch,), jnp.float32)}


def _pad_bias(b, cout, cop):
    if b is None:
        b = jnp.zeros((cout,), jnp.float32)
    return jnp.pad(b, (0, cop - cout)).reshape(1, cop).astype(jnp.float32)


def _prep_conv1x1(raw):
    w, b = raw["w"], raw["b"]
    cout, cin = w.shape[0], w.shape[1]
    cip, cop = _cpad(cin), _cpad(cout)
    wm = jnp.transpose(w[:, :, 0, 0], (1, 0))
    wm = jnp.pad(wm, ((0, cip - cin), (0, cop - cout))).astype(jnp.bfloat16)
    return {"w": wm, "b": _pad_bias(b, cout, cop), "cin": cin, "cout": cout}


def _prep_conv3x3(raw):
    w, b = raw["w"], raw["b"]
    cout, cin = w.shape[0], w.shape[1]
    cip, cop = _cpad(cin), _cpad(cout)
    wt = jnp.transpose(w, (2, 3, 1, 0)).reshape(9, cin, cout)     # (dy,dx) taps
    wt = jnp.pad(wt, ((0, 0), (0, cip - cin), (0, cop - cout))).astype(jnp.bfloat16)
    return {"w": wt, "b": _pad_bias(b, cout, cop), "cin": cin, "cout": cout}


def _prep_conv7x7(raw):
    w, b = raw["w"], raw["b"]
    cout, cin = w.shape[0], w.shape[1]
    k = 49 * cin
    kp, cop = _cpad(k), _cpad(cout)
    wm = jnp.transpose(w, (2, 3, 1, 0)).reshape(k, cout)          # (dy,dx,ci) rows
    wm = jnp.pad(wm, ((0, kp - k), (0, cop - cout))).astype(jnp.bfloat16)
    return {"w": wm, "b": _pad_bias(b, cout, cop), "cin": cin, "cout": cout}


def init_bottleneck(init, inp, outp):
    mid = outp // 2
    p = {
        "bn1": init.bn(inp),
        "conv1": _prep_conv1x1(init.conv(mid, inp, 1, 1, bias=True)),
        "bn2": init.bn(mid),
        "conv2": _prep_conv3x3(init.conv(mid, mid, 3, 3, bias=True)),
        "bn3": init.bn(mid),
        "conv3": _prep_conv1x1(init.conv(outp, mid, 1, 1, bias=True)),
    }
    if inp != outp:
        p["shortcut"] = _prep_conv1x1(init.conv(outp, inp, 1, 1, bias=False))
    return p


def init_hourglass(init, ch, depth, nblocks):
    hg = []
    for lvl in range(depth):
        n_branches = 4 if lvl == 0 else 3
        level = []
        for _ in range(n_branches):
            pair = []
            for _ in range(2):
                pair.append([init_bottleneck(init, ch, ch) for _ in range(nblocks)])
            level.append(pair)
        hg.append(level)
    return hg


def init_seednet(seed=0, nstacks=2, nblocks=1, njoints=21):
    init = _Init(seed)
    in_planes = 64
    p = {"conv1": _prep_conv7x7(init.conv(in_planes, 3, 7, 7, bias=True)),
         "bn1": init.bn(in_planes)}

    def make_residual(inp, outp):
        blocks = [init_bottleneck(init, inp, outp)]
        for _ in range(1, nblocks):
            blocks.append(init_bottleneck(init, outp, outp))
        return blocks, outp

    p["layer1"], in_planes = make_residual(in_planes, 2 * in_planes)   # 64 -> 128
    p["layer2"], in_planes = make_residual(in_planes, 2 * in_planes)   # 128 -> 256
    p["layer3"], in_planes = make_residual(in_planes, in_planes)       # 256 -> 256
    ch = in_planes

    for name in ("hg2b", "res1", "res2", "fc1", "fc2", "hm", "mask",
                 "_fc1", "_fc2", "_hm", "_mask"):
        p[name] = []
    for i in range(nstacks):
        p["hg2b"].append(init_hourglass(init, ch, depth=4, nblocks=nblocks))
        p["res1"].append([init_bottleneck(init, ch, ch) for _ in range(nblocks)])
        p["res2"].append([init_bottleneck(init, ch, ch) for _ in range(nblocks)])
        p["fc1"].append({"conv": _prep_conv1x1(init.conv(ch, ch, 1, 1, bias=False)),
                         "bn": init.bn(ch)})
        p["fc2"].append({"conv": _prep_conv1x1(init.conv(ch, ch, 1, 1, bias=False)),
                         "bn": init.bn(ch)})
        p["hm"].append(_prep_conv1x1(init.conv(njoints, ch, 1, 1, bias=True)))
        p["mask"].append(_prep_conv1x1(init.conv(1, ch, 1, 1, bias=True)))
        if i < nstacks - 1:
            p["_fc1"].append(_prep_conv1x1(init.conv(ch, ch, 1, 1, bias=False)))
            p["_fc2"].append(_prep_conv1x1(init.conv(ch, ch, 1, 1, bias=False)))
            p["_hm"].append(_prep_conv1x1(init.conv(ch, njoints, 1, 1, bias=False)))
            p["_mask"].append(_prep_conv1x1(init.conv(ch, 1, 1, 1, bias=False)))
    p["nstacks"] = nstacks
    return p


# ----------------------------------------------------------------------------
# forward pass (activations = {'d': [M, Cp] bf16, dims, 'stats': (2, Cp) f32})
# ----------------------------------------------------------------------------
def _act(d, n, h, w, c, stats=None):
    return {"d": d, "n": n, "h": h, "w": w, "c": c, "stats": stats}


def conv1x1(act, cp, bn=None, res=None, want_stats=True):
    pre = bn is not None
    d, st = _mm_call(
        act["d"],
        act["stats"] if pre else None,
        bn["gamma"] if pre else None,
        bn["beta"] if pre else None,
        cp["w"], cp["b"],
        res["d"] if res is not None else None,
        pre_affine=pre, with_res=res is not None, with_stats=want_stats)
    return _act(d, act["n"], act["h"], act["w"], cp["cout"], st)


def conv3x3(act, cp, bn):
    d, st = _conv3_call(act["d"], act["stats"], bn["gamma"], bn["beta"],
                        cp["w"], cp["b"], h=act["h"], w=act["w"])
    return _act(d, act["n"], act["h"], act["w"], cp["cout"], st)


def bottleneck_fwd(p, act):
    if "shortcut" in p:
        res = conv1x1(act, p["shortcut"], bn=None, res=None, want_stats=False)
    else:
        res = act
    out = conv1x1(act, p["conv1"], bn=p["bn1"], want_stats=True)   # BN1+ReLU fused
    out = conv3x3(out, p["conv2"], bn=p["bn2"])                    # BN2+ReLU fused
    out = conv1x1(out, p["conv3"], bn=p["bn3"], res=res)           # BN3+ReLU + residual fused
    return out


def residual_fwd(blocks, act):
    for bp in blocks:
        act = bottleneck_fwd(bp, act)
    return act


def maxpool(act):
    d, st = _pool_call(act["d"], n=act["n"], h=act["h"], w=act["w"])
    return _act(d, act["n"], act["h"] // 2, act["w"] // 2, act["c"], st)


def up_add(up_act, low_act):
    d, st = _upadd_call(up_act["d"], low_act["d"],
                        n=up_act["n"], h=up_act["h"], w=up_act["w"])
    return _act(d, up_act["n"], up_act["h"], up_act["w"], up_act["c"], st)


def fc_fwd(p, act):
    y = conv1x1(act, p["conv"], bn=None, want_stats=True)          # conv + stats epilogue
    d, _ = _affine_call(y["d"], y["stats"], p["bn"]["gamma"], p["bn"]["beta"],
                        with_stats=False)                          # BN + ReLU apply
    return _act(d, y["n"], y["h"], y["w"], y["c"], None)


def hourglass_fwd(hg, x):
    def rec(n, x):
        lev = hg[n - 1]
        up1_1 = residual_fwd(lev[0][0], x)
        up1_2 = residual_fwd(lev[0][1], x)
        low1 = maxpool(x)
        low1_1 = residual_fwd(lev[1][0], low1)
        low1_2 = residual_fwd(lev[1][1], low1)
        if n > 1:
            low2_1, low2_2, latent = rec(n - 1, low1_1)
        else:
            latent = low1_1
            low2_1 = residual_fwd(lev[3][0], low1_1)
            low2_2 = residual_fwd(lev[3][1], low1_2)
        low3_1 = residual_fwd(lev[2][0], low2_1)
        low3_2 = residual_fwd(lev[2][1], low2_2)
        out_1 = up_add(up1_1, low3_1)
        out_2 = up_add(up1_2, low3_2)
        return out_1, out_2, latent
    return rec(len(hg), x)


def _to_nchw(a):
    return _to_nchw_jit(a["d"], n=a["n"], h=a["h"], w=a["w"], c=a["c"])


def seednet_forward(p, x_nchw):
    n, _, hin, win = x_nchw.shape
    ho, wo = hin // 2, win // 2

    d, st = _stem_call(x_nchw, p["conv1"]["w"], p["conv1"]["b"])
    act = _act(d, n, ho, wo, p["conv1"]["cout"], st)
    d, st = _affine_call(act["d"], act["stats"],
                         p["bn1"]["gamma"], p["bn1"]["beta"], with_stats=True)
    act = _act(d, n, ho, wo, act["c"], st)
    act = residual_fwd(p["layer1"], act)
    act = maxpool(act)
    act = residual_fwd(p["layer2"], act)
    act = residual_fwd(p["layer3"], act)

    l_hm, l_mask, l_enc = [], [], []
    nstacks = p["nstacks"]
    for i in range(nstacks):
        y1, y2, _ = hourglass_fwd(p["hg2b"][i], act)
        y1 = residual_fwd(p["res1"][i], y1)
        y1 = fc_fwd(p["fc1"][i], y1)
        est_hm = conv1x1(y1, p["hm"][i], bn=None, want_stats=False)
        l_hm.append(est_hm)
        y2 = residual_fwd(p["res2"][i], y2)
        y2 = fc_fwd(p["fc2"][i], y2)
        est_mask = conv1x1(y2, p["mask"][i], bn=None, want_stats=False)
        l_mask.append(est_mask)
        if i < nstacks - 1:
            # x = x + _fc1(y1) + _fc2(y2) + _hm(est_hm) + _mask(est_mask), one kernel
            d, st = _merge_call(act["d"], y1["d"], p["_fc1"][i]["w"],
                                y2["d"], p["_fc2"][i]["w"],
                                est_hm["d"], p["_hm"][i]["w"],
                                est_mask["d"], p["_mask"][i]["w"])
            act = _act(d, act["n"], act["h"], act["w"], act["c"], st)
            l_enc.append(act)
        else:
            d = _add3_call(act["d"], y1["d"], y2["d"])
            l_enc.append(_act(d, act["n"], act["h"], act["w"], act["c"]))

    assert len(l_hm) == nstacks
    return ([_to_nchw(t) for t in l_hm],
            [_to_nchw(t) for t in l_mask],
            [_to_nchw(t) for t in l_enc])


# ----------------------------------------------------------------------------
if __name__ == "__main__":
    key = jax.random.PRNGKey(0)
    # depth-4 hourglass needs a >=16x16 feature map -> input >= 64x64
    x = jax.random.normal(key, (2, 3, 64, 64), dtype=jnp.float32)   # NCHW like PyTorch

    params = init_seednet(seed=0, nstacks=2, nblocks=1, njoints=21)
    l_hm, l_mask, l_enc = seednet_forward(params, x)
    jax.block_until_ready((l_hm, l_mask, l_enc))

    assert len(l_hm) == 2 and len(l_mask) == 2 and len(l_enc) == 2
    assert l_hm[0].shape == (2, 21, 16, 16)
    assert l_mask[0].shape == (2, 1, 16, 16)
    assert l_enc[0].shape == (2, 256, 16, 16)
    assert all(bool(jnp.isfinite(t).all()) for t in l_hm + l_mask + l_enc)
    print("KERNEL_OK")
</pallas_src>

<mosaic_0001>
module attributes {stable_mosaic.version = 11 : i64} {
  func.func @kernel(%arg0: i32, %arg1: memref<256x256xbf16, #tpu.memory_space<vmem>>, %arg2: memref<256x128xbf16, #tpu.memory_space<vmem>>, %arg3: memref<1x128xf32, #tpu.memory_space<vmem>>, %arg4: memref<256x128xbf16, #tpu.memory_space<vmem>>, %arg5: memref<8x128xf32, #tpu.memory_space<vmem>>) attributes {dimension_semantics = [#tpu.dimension_semantics<parallel>], iteration_bounds = array<i64: 8>, scalar_prefetch = 0 : i64, scratch_operands = 0 : i64, tpu.core_type = #tpu.core_type<tc>, window_params = [{transform_indices = @transform_0, window_bounds = array<i64: 256, 256>}, {pipeline_mode = #tpu.pipeline_mode<synchronous>, transform_indices = @transform_1, window_bounds = array<i64: 256, 128>}, {pipeline_mode = #tpu.pipeline_mode<synchronous>, transform_indices = @transform_2, window_bounds = array<i64: 1, 128>}, {transform_indices = @transform_3, window_bounds = array<i64: 256, 128>}, {transform_indices = @transform_4, window_bounds = array<i64: 8, 128>}]} {
    %c0 = arith.constant 0 : index
    %c0_0 = arith.constant 0 : index
    %0 = vector.load %arg1[%c0, %c0_0] : memref<256x256xbf16, #tpu.memory_space<vmem>>, vector<256x256xbf16>
    %c0_1 = arith.constant 0 : index
    %c0_2 = arith.constant 0 : index
    %1 = vector.load %arg2[%c0_1, %c0_2] : memref<256x128xbf16, #tpu.memory_space<vmem>>, vector<256x128xbf16>
    %cst = arith.constant dense<0.000000e+00> : vector<256x128xf32>
    %2 = tpu.matmul %0, %1, %cst {dimension_numbers = #tpu.dot_dimension_numbers<[1], [0], [0], [1], [0, 0, 1, 1], [], []>} : vector<256x256xbf16>, vector<256x128xbf16>, vector<256x128xf32> -> vector<256x128xf32>
    %c0_3 = arith.constant 0 : index
    %c0_4 = arith.constant 0 : index
    %3 = vector.load %arg3[%c0_3, %c0_4] : memref<1x128xf32, #tpu.memory_space<vmem>>, vector<1x128xf32>
    %4 = vector.broadcast %3 : vector<1x128xf32> to vector<256x128xf32>
    %5 = arith.addf %2, %4 : vector<256x128xf32>
    %6 = arith.truncf %5 : vector<256x128xf32> to vector<256x128xbf16>
    %c0_5 = arith.constant 0 : index
    %c0_6 = arith.constant 0 : index
    %7 = vector.load %arg4[%c0_5, %c0_6] : memref<256x128xbf16, #tpu.memory_space<vmem>>, vector<256x128xbf16>
    tpu.vector_store %arg4[%c0_5, %c0_6], %6 {strides = array<i32>} : memref<256x128xbf16, #tpu.memory_space<vmem>>, vector<256x128xbf16>,
    %cst_7 = arith.constant dense<0.000000e+00> : vector<128xf32>
    %8 = vector.multi_reduction <add>, %5, %cst_7 [0] : vector<256x128xf32> to vector<128xf32>
    %9 = vector.shape_cast %8 : vector<128xf32> to vector<1x128xf32>
    %10 = arith.mulf %5, %5 : vector<256x128xf32>
    %cst_8 = arith.constant dense<0.000000e+00> : vector<128xf32>
    %11 = vector.multi_reduction <add>, %10, %cst_8 [0] : vector<256x128xf32> to vector<128xf32>
    %12 = vector.shape_cast %11 : vector<128xf32> to vector<1x128xf32>
    %cst_9 = arith.constant 0.000000e+00 : f32
    %13 = vector.broadcast %cst_9 : f32 to vector<6x128xf32>
    %14 = tpu.concatenate %9, %12, %13 in 0 : vector<1x128xf32>, vector<1x128xf32>, vector<6x128xf32> -> vector<8x128xf32>
    %c0_10 = arith.constant 0 : index
    %c0_11 = arith.constant 0 : index
    %15 = vector.load %arg5[%c0_10, %c0_11] : memref<8x128xf32, #tpu.memory_space<vmem>>, vector<8x128xf32>
    tpu.vector_store %arg5[%c0_10, %c0_11], %14 {strides = array<i32>} : memref<8x128xf32, #tpu.memory_space<vmem>>, vector<8x128xf32>,
    return
  }
  func.func @transform_0(%arg0: i32) -> (i32, i32) {
    %c0_i32 = arith.constant 0 : i32
    %c0_i32_0 = arith.constant 0 : i32
    return %arg0, %c0_i32 : i32, i32
  }
  func.func @transform_1(%arg0: i32) -> (i32, i32) {
    %c0_i32 = arith.constant 0 : i32
    %c0_i32_0 = arith.constant 0 : i32
    %c0_i32_1 = arith.constant 0 : i32
    return %c0_i32, %c0_i32_0 : i32, i32
  }
  func.func @transform_2(%arg0: i32) -> (i32, i32) {
    %c0_i32 = arith.constant 0 : i32
    %c0_i32_0 = arith.constant 0 : i32
    %c0_i32_1 = arith.constant 0 : i32
    return %c0_i32, %c0_i32_0 : i32, i32
  }
  func.func @transform_3(%arg0: i32) -> (i32, i32) {
    %c0_i32 = arith.constant 0 : i32
    %c0_i32_0 = arith.constant 0 : i32
    return %arg0, %c0_i32 : i32, i32
  }
  func.func @transform_4(%arg0: i32) -> (i32, i32) {
    %c0_i32 = arith.constant 0 : i32
    %c0_i32_0 = arith.constant 0 : i32
    return %arg0, %c0_i32 : i32, i32
  }
}

</mosaic_0001>

<bundles_post_ra>
// kernel: _stem_call.1
= control target key start
LH: loop header
LB: loop body
LE: loop exit
PB: predicated region body
PF: predicated region fallthrough
CT: control target
= control target key end

     0   :  { %10 = vsyncpa [#allocation3], 0  ;;  %s1891_s0 = inlined_call_operand.vmem [shape: bf16[2048,256], index: 0, kind: input, shape index: {}]   ;;  %s1892_s1 = inlined_call_operand.vmem [shape: bf16[256,128], index: 1, kind: input, shape index: {}]   ;;  %s1893_s2 = inlined_call_operand.vmem [shape: f32[1,128], index: 2, kind: input, shape index: {}]   ;;  %s1894_s3 = inlined_call_operand.hbm [shape: bf16[2048,128], index: 3, kind: output, shape index: {0}]   ;;  %s1895_s4 = inlined_call_operand.vmem [shape: f32[64,128], index: 4, kind: output, shape index: {1}]  }
   0x1   :  { %12 = vsyncpa [#allocation3 + $0x1], 0  ;;  %s1499_s15 = smov 0   ;;  %s1501_s16 = smov 0  }
   0x2   :  { %s1503_s17 = smov 0   ;;  %s1505_s18 = smov 0  }
   0x3 LB: > { %s1520_s19 = sadd.s32 4294967295, %s1470_s18   ;;  %s999_s20 = sadd.s32 4294967294, %s1470_s18   ;;  %s1470_s18 = sphi %s1505_s18, %s1901_s18   ;;  %s1466_s17 = sphi %s1503_s17, %s1900_s17   ;;  %s1462_s16 = sphi %s1501_s16, %s1899_s16   ;;  %s1458_s15 = sphi %s1499_s15, %s1898_s15  }
   0x4   : > { %s1524_s21 = sadd.s32 1, %s1470_s18   ;;  %s93_s22 = sadd.s32 1, %s1466_s17 }
   0x5   : > { %s90_s23 = ssub.s32 %s1470_s18, %s1524_s21  ;;  %p103_p0 = scmp.ne.s32.totalorder %s1466_s17, %s1462_s16 }
   0x6   : > { %p91_p1 = scmp.eq.s32.totalorder %s90_s23, 0  ;;  %p104_p2 = scmp.eq.s32.totalorder %s1520_s19, 7 }
   0x7   : > { %p109_p3 = scmp.ne.s32.totalorder %s1462_s16, %s1458_s15  ;;  %p110_p4 = scmp.eq.s32.totalorder %s999_s20, 7 }
   0x8   : > { %s1535_s24 = scalar_select %p91_p1, %s1466_s17, %s93_s22  }
   0x9   : > { %p1537_p5 = por %p104_p2, %p103_p0  ;;  %p1541_p6 = por %p110_p4, %p109_p3 }
   0xa   : > { %p1002_p7 = scmp.ge.s32.totalorder %s1470_s18, 1  ;;  %p170_p8 = scmp.lt.s32.totalorder %s1470_s18, 9 }
   0xc   : > { %p171_p9 = pnand %p1002_p7, %p170_p8 }
   0xd   : > { %s1004_s13 = sshll.u32 (!%p171_p9), %s1520_s19, 5  ;;  %s192_s6 = sand.u32 (!%p171_p9), 1, %s1462_s16  }
   0xe   : > { %174 = sbr.rel (%p171_p9) target bundleno = 352 (0x160), region = 32  ;;  %p202_p10 = scmp.lt.s32.totalorder (!%p171_p9), %s1004_s13, 255 }
   0xf   : > { %s1003_s7 = sshll.u32 (!%p171_p9), %s192_s6, 7  ;;  %s891_s22 = scalar_lea.sflag (!%p171_p9), [#allocation3], %s192_s6 }
  0x10   : > { %s1676_s8 = scalar_lea.vmem (!%p171_p9), [#allocation2], %s1003_s7  ;;  %s1428_s29 = scalar_lea.hbm (!%p171_p9), %s1894_s3, 1024 }
  0x11   : > { %s907_s14 = sshll.u32 (!%p171_p9), %s1676_s8, 4  ;;  %s1816_s14 = int_to_ptr.vmem [resolvable:$true] %s907_s14 }
  0x13   : > { %v1245_v0 = vld [vmem:[%s1892_s1 + $0x38] sm:$0xff]  ;;  %v1244_v2 = vld [vmem:[%s1892_s1 + $0x30] sm:$0xff]  ;;  %v1243_v4 = vld [vmem:[%s1892_s1 + $0x28] sm:$0xff]  ;;  %s1903_s13 = smov (!%p202_p10, %s1004_s13), 255 }
  0x14   : > { %v1253_v1 = vld [vmem:[%s1892_s1 + $0x78] sm:$0xff]  ;;  %537 = vmatpush.bf16.msra.mxu0 %v1245_v0  ;;  %v1252_v3 = vld [vmem:[%s1892_s1 + $0x70] sm:$0xff]  ;;  %1350 = vmatpush.bf16.msra.mxu2 %v1245_v0  ;;  %v1251_v5 = vld [vmem:[%s1892_s1 + $0x68] sm:$0xff]  ;;  %s1205_s9 = sshll.u32 %s1903_s13, 3 }
  0x15   : > { %626 = vmatpush.bf16.msra.mxu1 %v1253_v1  ;;  %1358 = vmatpush.bf16.msra.mxu3 %v1253_v1  ;;  %v1242_v6 = vld [vmem:[%s1892_s1 + $0x20] sm:$0xff]  ;;  %v1241_v8 = vld [vmem:[%s1892_s1 + $0x18] sm:$0xff]  ;;  %v1240_v10 = vld [vmem:[%s1892_s1 + $0x10] sm:$0xff]  ;;  %s1593_s23 = scalar_lea.vmem %s1891_s0, %s1205_s9  ;;  %s1254_s9 = sshll.u32 %s1520_s19, 7 }
  0x16   : > { %v1250_v7 = vld [vmem:[%s1892_s1 + $0x60] sm:$0xff]  ;;  %v1249_v9 = vld [vmem:[%s1892_s1 + $0x58] sm:$0xff]  ;;  %v1248_v11 = vld [vmem:[%s1892_s1 + $0x50] sm:$0xff]  ;;  %s906_s12 = scalar_lea.hbm %s1894_s3, %s1254_s9 }
  0x17   : > { %v1239_v12 = vld [vmem:[%s1892_s1 + $0x8] sm:$0xff]  ;;  %v1238_v14 = vld [vmem:[%s1892_s1] sm:$0xff]  ;;  %v1018_v28 = vld [vmem:[%s1593_s23 + $0x10] sm:$0xf]  ;;  %s909_s20 = sshll.u32 %s906_s12, 4  ;;  %s910_s20 = int_to_ptr.hbm [resolvable:$true] %s909_s20 }
  0x18   : > { %538 = vmatpush.bf16.msra.mxu0 %v1244_v2  ;;  %1351 = vmatpush.bf16.msra.mxu2 %v1244_v2  ;;  %v1247_v13 = vld [vmem:[%s1892_s1 + $0x48] sm:$0xff]  ;;  %v1246_v15 = vld [vmem:[%s1892_s1 + $0x40] sm:$0xff]  ;;  %v1209_v29 = vld [vmem:[%s1593_s23 + $0x14] sm:$0xf0] }
  0x19   : > { %627 = vmatpush.bf16.msra.mxu1 %v1252_v3  ;;  %1359 = vmatpush.bf16.msra.mxu3 %v1252_v3  ;;  %v1010_v16 = vld [vmem:[%s1593_s23] sm:$0xf]  ;;  %v1207_v17 = vld [vmem:[%s1593_s23 + $0x4] sm:$0xf0]  ;;  %v1206_v18 = vld [vmem:[%s1593_s23 + $0x4] sm:$0xf]  ;;  %v1019_v36 = vor.u32 %v1209_v29, %v1018_v28 }
  0x1a   : > { %v1012_v19 = vld [vmem:[%s1593_s23 + $0x8] sm:$0xf0]  ;;  %v1074_v20 = vld [vmem:[%s1593_s23 + $0x80] sm:$0xf]  ;;  %v1223_v21 = vld [vmem:[%s1593_s23 + $0x84] sm:$0xf0]  ;;  %v1011_v24 = vor.u32 %v1207_v17, %v1010_v16 }
  0x1b   : > { %v1222_v22 = vld [vmem:[%s1593_s23 + $0x84] sm:$0xf]  ;;  %v1076_v23 = vld [vmem:[%s1593_s23 + $0x88] sm:$0xf0]  ;;  %v1015_v25 = vor.u32 %v1206_v18, %v1012_v19  ;;  %v1075_v26 = vor.u32 %v1223_v21, %v1074_v20  ;;  %v1208_v30 = vld [vmem:[%s1593_s23 + $0x14] sm:$0xf] }
  0x1c   : > { %539 = vmatpush.bf16.msra.mxu0 %v1243_v4  ;;  %1352 = vmatpush.bf16.msra.mxu2 %v1243_v4  ;;  %v1079_v27 = vor.u32 %v1222_v22, %v1076_v23  ;;  %v1020_v31 = vld [vmem:[%s1593_s23 + $0x18] sm:$0xf0]  ;;  %v1082_v32 = vld [vmem:[%s1593_s23 + $0x90] sm:$0xf]  ;;  %v1225_v33 = vld [vmem:[%s1593_s23 + $0x94] sm:$0xf0] }
  0x1d   : > { %628 = vmatpush.bf16.msra.mxu1 %v1251_v5  ;;  %1360 = vmatpush.bf16.msra.mxu3 %v1251_v5  ;;  %v1224_v34 = vld [vmem:[%s1593_s23 + $0x94] sm:$0xf]  ;;  %v1084_v35 = vld [vmem:[%s1593_s23 + $0x98] sm:$0xf0]  ;;  %v1023_v37 = vor.u32 %v1208_v30, %v1020_v31  ;;  %v1083_v38 = vor.u32 %v1225_v33, %v1082_v32  ;;  %v1026_v40 = vld [vmem:[%s1593_s23 + $0x20] sm:$0xf] }
  0x1e   : > { %v1087_v39 = vor.u32 %v1224_v34, %v1084_v35  ;;  %v1211_v41 = vld [vmem:[%s1593_s23 + $0x24] sm:$0xf0]  ;;  %v1210_v42 = vld [vmem:[%s1593_s23 + $0x24] sm:$0xf]  ;;  %v1028_v43 = vld [vmem:[%s1593_s23 + $0x28] sm:$0xf0] }
  0x1f   : > { %v1090_v44 = vld [vmem:[%s1593_s23 + $0xa0] sm:$0xf]  ;;  %v1227_v45 = vld [vmem:[%s1593_s23 + $0xa4] sm:$0xf0]  ;;  %v1226_v46 = vld [vmem:[%s1593_s23 + $0xa4] sm:$0xf]  ;;  %v1027_v48 = vor.u32 %v1211_v41, %v1026_v40  ;;  %v1031_v49 = vor.u32 %v1210_v42, %v1028_v43 }
  0x20   : > { %540 = vmatpush.bf16.msra.mxu0 %v1242_v6  ;;  %1353 = vmatpush.bf16.msra.mxu2 %v1242_v6  ;;  %v1092_v47 = vld [vmem:[%s1593_s23 + $0xa8] sm:$0xf0]  ;;  %v1091_v50 = vor.u32 %v1227_v45, %v1090_v44  ;;  %v1034_v52 = vld [vmem:[%s1593_s23 + $0x30] sm:$0xf]  ;;  %v1213_v53 = vld [vmem:[%s1593_s23 + $0x34] sm:$0xf0] }
  0x21   : > { %629 = vmatpush.bf16.msra.mxu1 %v1250_v7  ;;  %1361 = vmatpush.bf16.msra.mxu3 %v1250_v7  ;;  %v1095_v51 = vor.u32 %v1226_v46, %v1092_v47  ;;  %v1212_v54 = vld [vmem:[%s1593_s23 + $0x34] sm:$0xf]  ;;  %v1036_v55 = vld [vmem:[%s1593_s23 + $0x38] sm:$0xf0]  ;;  %v1098_v56 = vld [vmem:[%s1593_s23 + $0xb0] sm:$0xf]  ;;  %v1035_v60 = vor.u32 %v1213_v53, %v1034_v52 }
  0x22   : > { %v1229_v57 = vld [vmem:[%s1593_s23 + $0xb4] sm:$0xf0]  ;;  %v1228_v58 = vld [vmem:[%s1593_s23 + $0xb4] sm:$0xf]  ;;  %v1100_v59 = vld [vmem:[%s1593_s23 + $0xb8] sm:$0xf0]  ;;  %v1039_v61 = vor.u32 %v1212_v54, %v1036_v55 }
  0x23   : > { %v1099_v62 = vor.u32 %v1229_v57, %v1098_v56  ;;  %v1103_v63 = vor.u32 %v1228_v58, %v1100_v59  ;;  %v1042_v0 = vld [vmem:[%s1593_s23 + $0x40] sm:$0xf]  ;;  %v1215_v1 = vld [vmem:[%s1593_s23 + $0x44] sm:$0xf0]  ;;  %v1214_v2 = vld [vmem:[%s1593_s23 + $0x44] sm:$0xf] }
  0x24   : > { %541 = vmatpush.bf16.msra.mxu0 %v1241_v8  ;;  %1354 = vmatpush.bf16.msra.mxu2 %v1241_v8  ;;  %v1044_v3 = vld [vmem:[%s1593_s23 + $0x48] sm:$0xf0]  ;;  %v1106_v4 = vld [vmem:[%s1593_s23 + $0xc0] sm:$0xf]  ;;  %v1231_v5 = vld [vmem:[%s1593_s23 + $0xc4] sm:$0xf0]  ;;  %v1043_v8 = vor.u32 %v1215_v1, %v1042_v0 }
  0x25   : > { %630 = vmatpush.bf16.msra.mxu1 %v1249_v9  ;;  %1362 = vmatpush.bf16.msra.mxu3 %v1249_v9  ;;  %v1230_v6 = vld [vmem:[%s1593_s23 + $0xc4] sm:$0xf]  ;;  %v1108_v7 = vld [vmem:[%s1593_s23 + $0xc8] sm:$0xf0]  ;;  %v1047_v9 = vor.u32 %v1214_v2, %v1044_v3  ;;  %v1114_v16 = vld [vmem:[%s1593_s23 + $0xd0] sm:$0xf] }
  0x26   : > { %v1233_v17 = vld [vmem:[%s1593_s23 + $0xd4] sm:$0xf0]  ;;  %v1232_v18 = vld [vmem:[%s1593_s23 + $0xd4] sm:$0xf]  ;;  %v1116_v19 = vld [vmem:[%s1593_s23 + $0xd8] sm:$0xf0] }
  0x27   : > { %v1115_v22 = vor.u32 %v1233_v17, %v1114_v16  ;;  %v1119_v23 = vor.u32 %v1232_v18, %v1116_v19  ;;  %v1122_v28 = vld [vmem:[%s1593_s23 + $0xe0] sm:$0xf]  ;;  %v1235_v29 = vld [vmem:[%s1593_s23 + $0xe4] sm:$0xf0]  ;;  %v1234_v30 = vld [vmem:[%s1593_s23 + $0xe4] sm:$0xf] }
  0x28   : > { %542 = vmatpush.bf16.msra.mxu0 %v1240_v10  ;;  %1355 = vmatpush.bf16.msra.mxu2 %v1240_v10  ;;  %v1107_v10 = vor.u32 %v1231_v5, %v1106_v4  ;;  %v1124_v31 = vld [vmem:[%s1593_s23 + $0xe8] sm:$0xf0]  ;;  %v1123_v34 = vor.u32 %v1235_v29, %v1122_v28  ;;  %v1130_v40 = vld [vmem:[%s1593_s23 + $0xf0] sm:$0xf]  ;;  %v1237_v41 = vld [vmem:[%s1593_s23 + $0xf4] sm:$0xf0] }
  0x29   : > { %631 = vmatpush.bf16.msra.mxu1 %v1248_v11  ;;  %1363 = vmatpush.bf16.msra.mxu3 %v1248_v11  ;;  %v1111_v11 = vor.u32 %v1230_v6, %v1108_v7  ;;  %v1127_v35 = vor.u32 %v1234_v30, %v1124_v31  ;;  %v1236_v42 = vld [vmem:[%s1593_s23 + $0xf4] sm:$0xf]  ;;  %v1132_v43 = vld [vmem:[%s1593_s23 + $0xf8] sm:$0xf0]  ;;  %v1131_v46 = vor.u32 %v1237_v41, %v1130_v40 }
  0x2a   : > { %v1135_v47 = vor.u32 %v1236_v42, %v1132_v43 }
  0x2c   : > { %543 = vmatpush.bf16.msra.mxu0 %v1239_v12  ;;  %1356 = vmatpush.bf16.msra.mxu2 %v1239_v12  ;;  %v1050_v12 = vld [vmem:[%s1593_s23 + $0x50] sm:$0xf] }
  0x2d   : > { %632 = vmatpush.bf16.msra.mxu1 %v1247_v13  ;;  %1364 = vmatpush.bf16.msra.mxu3 %v1247_v13  ;;  %v1217_v13 = vld [vmem:[%s1593_s23 + $0x54] sm:$0xf0] }
  0x2e   : > { %v1051_v20 = vor.u32 %v1217_v13, %v1050_v12 }
  0x30   : > { %544 = vmatpush.bf16.msra.mxu0 %v1238_v14  ;;  %1357 = vmatpush.bf16.msra.mxu2 %v1238_v14  ;;  %v1216_v14 = vld [vmem:[%s1593_s23 + $0x54] sm:$0xf] }
  0x31   : > { %633 = vmatpush.bf16.msra.mxu1 %v1246_v15  ;;  %1365 = vmatpush.bf16.msra.mxu3 %v1246_v15  ;;  %v1052_v15 = vld [vmem:[%s1593_s23 + $0x58] sm:$0xf0] }
  0x32   : > { %v1055_v21 = vor.u32 %v1216_v14, %v1052_v15 }
  0x33   : > { %545 = vmatmul.bf16.vlgmr.msra.gmra.mxu0 %v1011_v24  ;;  %585 = vmatmul.bf16.vlgmr.msra.gmra.mxu2 %v1075_v26  ;;  %v1058_v24 = vld [vmem:[%s1593_s23 + $0x60] sm:$0xf]  ;;  %v1218_v26 = vld [vmem:[%s1593_s23 + $0x64] sm:$0xf] }
  0x34   : > { %634 = vmatmul.bf16.vlgmr.msra.gmra.mxu1 %v1015_v25  ;;  %674 = vmatmul.bf16.vlgmr.msra.gmra.mxu3 %v1079_v27  ;;  %v1219_v25 = vld [vmem:[%s1593_s23 + $0x64] sm:$0xf0]  ;;  %v1060_v27 = vld [vmem:[%s1593_s23 + $0x68] sm:$0xf0] }
  0x35   : > { %v1059_v32 = vor.u32 %v1219_v25, %v1058_v24  ;;  %v1063_v33 = vor.u32 %v1218_v26, %v1060_v27 }
  0x43   : > { %550 = vmatmul.bf16.gmra.mxu0 %v1019_v36  ;;  %590 = vmatmul.bf16.gmra.mxu2 %v1083_v38  ;;  %v1066_v36 = vld [vmem:[%s1593_s23 + $0x70] sm:$0xf]  ;;  %v1220_v38 = vld [vmem:[%s1593_s23 + $0x74] sm:$0xf] }
  0x44   : > { %639 = vmatmul.bf16.gmra.mxu1 %v1023_v37  ;;  %679 = vmatmul.bf16.gmra.mxu3 %v1087_v39  ;;  %v1221_v37 = vld [vmem:[%s1593_s23 + $0x74] sm:$0xf0]  ;;  %v1068_v39 = vld [vmem:[%s1593_s23 + $0x78] sm:$0xf0]  ;;  %s1422_s23 = sshra.s32 %s910_s20, 4  ;;  %s1423_s23 = int_to_ptr.hbm [resolvable:$true] %s1422_s23 }
  0x45   : > { %v1067_v44 = vor.u32 %v1221_v37, %v1066_v36  ;;  %v1071_v45 = vor.u32 %v1220_v38, %v1068_v39  ;;  %s1424_s13 = scalar_lea.hbm %s1423_s23, 128  ;;  %p1429_p0 = scmp.lt.s32.totalorder %s1423_s23, %s1894_s3 }
  0x46   : > { %p1425_p11 = scmp.ne.s32.totalorder %s1423_s23, %s1424_s13  ;;  %p1430_p1 = scmp.lt.s32.totalorder %s1428_s29, %s1424_s13 }
  0x48   : > { %p1426_p12 = pnand %p1425_p11, %p1537_p5  ;;  %p1431_p2 = por %p1430_p1, %p1429_p0 }
  0x4a   : > { %p1427_p13 = pneg %p1426_p12 }
  0x4c   : > { %p1432_p3 = pnand %p1431_p2, %p1427_p13 }
  0x53   : > { %555 = vmatmul.bf16.gmra.mxu0 %v1027_v48  ;;  %595 = vmatmul.bf16.gmra.mxu2 %v1091_v50  ;;  %v1668_v50 = vld [vmem:[%s1893_s2] ss:$0 sm:$0xff] }
  0x54   : > { %644 = vmatmul.bf16.gmra.mxu1 %v1031_v49  ;;  %684 = vmatmul.bf16.gmra.mxu3 %v1095_v51 }
  0x63   : > { %560 = vmatmul.bf16.gmra.mxu0 %v1035_v60  ;;  %600 = vmatmul.bf16.gmra.mxu2 %v1099_v62 }
  0x64   : > { %649 = vmatmul.bf16.gmra.mxu1 %v1039_v61  ;;  %689 = vmatmul.bf16.gmra.mxu3 %v1103_v63 }
  0x73   : > { %565 = vmatmul.bf16.gmra.mxu0 %v1043_v8  ;;  %605 = vmatmul.bf16.gmra.mxu2 %v1107_v10 }
  0x74   : > { %654 = vmatmul.bf16.gmra.mxu1 %v1047_v9  ;;  %694 = vmatmul.bf16.gmra.mxu3 %v1111_v11 }
  0x83   : > { %570 = vmatmul.bf16.gmra.mxu0 %v1051_v20  ;;  %610 = vmatmul.bf16.gmra.mxu2 %v1115_v22 }
  0x84   : > { %659 = vmatmul.bf16.gmra.mxu1 %v1055_v21  ;;  %699 = vmatmul.bf16.gmra.mxu3 %v1119_v23 }
  0x93   : > { %575 = vmatmul.bf16.gmra.mxu0 %v1059_v32  ;;  %615 = vmatmul.bf16.gmra.mxu2 %v1123_v34 }
  0x94   : > { %664 = vmatmul.bf16.gmra.mxu1 %v1063_v33  ;;  %704 = vmatmul.bf16.gmra.mxu3 %v1127_v35 }
  0xa3   : > { %580 = vmatmul.bf16.gmra.mxu0 %v1067_v44  ;;  %620 = vmatmul.bf16.gmra.mxu2 %v1131_v46 }
  0xa4   : > { %669 = vmatmul.bf16.gmra.mxu1 %v1071_v45  ;;  %709 = vmatmul.bf16.gmra.mxu3 %v1135_v47 }
  0xb0   : > { %v546_v48 = vpop.f32.mrf.mxu0 }
  0xb1   : > { %v635_v49 = vpop.f32.mrf.mxu1  ;;  %v547_v51 = vadd.f32 %v1668_v50, %v546_v48 }
  0xb3   : > { %v636_v56 = vadd.f32 %v635_v49, %v547_v51 }
  0xb5   : > { %v816_v60 = vmul.f32 %v636_v56, %v636_v56 }
  0xb6   : > { %v586_v52 = vpop.f32.mrf.mxu2 }
  0xb7   : > { %v675_v53 = vpop.f32.mrf.mxu3  ;;  %v587_v59 = vadd.f32 %v1668_v50, %v586_v52 }
  0xb8   : > { %v548_v54 = vpop.f32.mrf.mxu0 }
  0xb9   : > { %v637_v55 = vpop.f32.mrf.mxu1  ;;  %v549_v57 = vadd.f32 %v1668_v50, %v548_v54  ;;  %v1679_v5 = vadd.f32 %v675_v53, %v587_v59 }
  0xbb   : > { %v638_v58 = vadd.f32 %v637_v55, %v549_v57 }
  0xbd   : > { %v1258_v61 = vpack.c.bf16 %v638_v58, %v636_v56  ;;  %v779_v62 = vadd.f32 %v638_v58, %v636_v56  ;;  %v817_v63 = vmul.f32 %v638_v58, %v638_v58 }
  0xbe   : > { %v588_v1 = vpop.f32.mrf.mxu2 }
  0xbf   : > { %1259 = vst [vmem:[%s1676_s8] sm:$0xff] %v1258_v61   ;;  %v848_v0 = vadd.f32 %v817_v63, %v816_v60  ;;  %v677_v2 = vpop.f32.mrf.mxu3  ;;  %v589_v6 = vadd.f32 %v1668_v50, %v588_v1 }
  0xc0   : > { %v551_v3 = vpop.f32.mrf.mxu0 }
  0xc1   : > { %v640_v4 = vpop.f32.mrf.mxu1  ;;  %v552_v7 = vadd.f32 %v1668_v50, %v551_v3  ;;  %v1683_v8 = vadd.f32 %v677_v2, %v589_v6 }
  0xc3   : > { %v641_v9 = vadd.f32 %v640_v4, %v552_v7  ;;  %v1298_v10 = vpack.c.bf16 %v1683_v8, %v1679_v5 }
  0xc5   : > { %v780_v11 = vadd.f32 %v779_v62, %v641_v9  ;;  %v818_v12 = vmul.f32 %v641_v9, %v641_v9  ;;  %1342 = vst [vmem:[%s1676_s8 + $0x40] sm:$0xff] %v1298_v10  }
  0xc6   : > { %v591_v14 = vpop.f32.mrf.mxu2 }
  0xc7   : > { %v849_v13 = vadd.f32 %v848_v0, %v818_v12  ;;  %v680_v15 = vpop.f32.mrf.mxu3  ;;  %v592_v20 = vadd.f32 %v1668_v50, %v591_v14 }
  0xc8   : > { %v553_v16 = vpop.f32.mrf.mxu0 }
  0xc9   : > { %v642_v17 = vpop.f32.mrf.mxu1  ;;  %v554_v18 = vadd.f32 %v1668_v50, %v553_v16  ;;  %v1695_v29 = vadd.f32 %v680_v15, %v592_v20 }
  0xcb   : > { %v643_v19 = vadd.f32 %v642_v17, %v554_v18 }
  0xcd   : > { %v1263_v21 = vpack.c.bf16 %v643_v19, %v641_v9  ;;  %v1690_v22 = vadd.f32 %v780_v11, %v643_v19  ;;  %v819_v23 = vmul.f32 %v643_v19, %v643_v19 }
  0xce   : > { %v593_v25 = vpop.f32.mrf.mxu2 }
  0xcf   : > { %1335 = vst [vmem:[%s1676_s8 + $0x8] sm:$0xff] %v1263_v21   ;;  %v1693_v24 = vadd.f32 %v849_v13, %v819_v23  ;;  %v682_v26 = vpop.f32.mrf.mxu3  ;;  %v594_v30 = vadd.f32 %v1668_v50, %v593_v25 }
  0xd0   : > { %v556_v27 = vpop.f32.mrf.mxu0 }
  0xd1   : > { %v645_v28 = vpop.f32.mrf.mxu1  ;;  %v1698_v31 = vadd.f32 %v682_v26, %v594_v30  ;;  %v557_v33 = vadd.f32 %v1668_v50, %v556_v27 }
  0xd3   : > { %v1303_v32 = vpack.c.bf16 %v1698_v31, %v1695_v29  ;;  %v1705_v39 = vadd.f32 %v645_v28, %v557_v33 }
  0xd5   : > { %1343 = vst [vmem:[%s1676_s8 + $0x48] sm:$0xff] %v1303_v32  }
  0xd6   : > { %v596_v34 = vpop.f32.mrf.mxu2 }
  0xd7   : > { %v685_v35 = vpop.f32.mrf.mxu3  ;;  %v597_v41 = vadd.f32 %v1668_v50, %v596_v34 }
  0xd8   : > { %v558_v36 = vpop.f32.mrf.mxu0 }
  0xd9   : > { %v647_v37 = vpop.f32.mrf.mxu1  ;;  %v559_v38 = vadd.f32 %v1668_v50, %v558_v36  ;;  %v1713_v47 = vadd.f32 %v685_v35, %v597_v41 }
  0xdb   : > { %v1707_v40 = vadd.f32 %v647_v37, %v559_v38 }
  0xdd   : > { %v1268_v42 = vpack.c.bf16 %v1707_v40, %v1705_v39 }
  0xde   : > { %v598_v43 = vpop.f32.mrf.mxu2 }
  0xdf   : > { %1336 = vst [vmem:[%s1676_s8 + $0x10] sm:$0xff] %v1268_v42   ;;  %v687_v44 = vpop.f32.mrf.mxu3  ;;  %v599_v48 = vadd.f32 %v1668_v50, %v598_v43 }
  0xe0   : > { %v561_v45 = vpop.f32.mrf.mxu0 }
  0xe1   : > { %v650_v46 = vpop.f32.mrf.mxu1  ;;  %v1716_v49 = vadd.f32 %v687_v44, %v599_v48  ;;  %v562_v52 = vadd.f32 %v1668_v50, %v561_v45 }
  0xe3   : > { %v1308_v51 = vpack.c.bf16 %v1716_v49, %v1713_v47  ;;  %v1723_v58 = vadd.f32 %v650_v46, %v562_v52  ;;  %v820_v52 = vmul.f32 %v1705_v39, %v1705_v39 }
  0xe5   : > { %1344 = vst [vmem:[%s1676_s8 + $0x50] sm:$0xff] %v1308_v51  }
  0xe6   : > { %v601_v53 = vpop.f32.mrf.mxu2 }
  0xe7   : > { %v690_v54 = vpop.f32.mrf.mxu3  ;;  %v602_v60 = vadd.f32 %v1668_v50, %v601_v53 }
  0xe8   : > { %v563_v55 = vpop.f32.mrf.mxu0 }
  0xe9   : > { %v652_v56 = vpop.f32.mrf.mxu1  ;;  %v564_v57 = vadd.f32 %v1668_v50, %v563_v55  ;;  %v1731_v2 = vadd.f32 %v690_v54, %v602_v60  ;;  %v821_v54 = vmul.f32 %v1707_v40, %v1707_v40  ;;  %v782_v55 = vadd.f32 %v1690_v22, %v1705_v39 }
  0xeb   : > { %v1725_v59 = vadd.f32 %v652_v56, %v564_v57 }
  0xed   : > { %v1273_v61 = vpack.c.bf16 %v1725_v59, %v1723_v58  ;;  %v823_v22 = vmul.f32 %v1725_v59, %v1725_v59 }
  0xee   : > { %v603_v62 = vpop.f32.mrf.mxu2 }
  0xef   : > { %1337 = vst [vmem:[%s1676_s8 + $0x18] sm:$0xff] %v1273_v61   ;;  %v692_v63 = vpop.f32.mrf.mxu3  ;;  %v604_v3 = vadd.f32 %v1668_v50, %v603_v62  ;;  %v851_v61 = vadd.f32 %v1693_v24, %v820_v52 }
  0xf0   : > { %v566_v0 = vpop.f32.mrf.mxu0 }
  0xf1   : > { %v655_v1 = vpop.f32.mrf.mxu1  ;;  %v1734_v4 = vadd.f32 %v692_v63, %v604_v3  ;;  %v567_v7 = vadd.f32 %v1668_v50, %v566_v0  ;;  %v783_v0 = vadd.f32 %v782_v55, %v1707_v40 }
  0xf3   : > { %v1313_v6 = vpack.c.bf16 %v1734_v4, %v1731_v2  ;;  %v656_v14 = vadd.f32 %v655_v1, %v567_v7  ;;  %v822_v1 = vmul.f32 %v1723_v58, %v1723_v58  ;;  %v784_v7 = vadd.f32 %v783_v0, %v1723_v58 }
  0xf5   : > { %1345 = vst [vmem:[%s1676_s8 + $0x58] sm:$0xff] %v1313_v6   ;;  %v852_v6 = vadd.f32 %v851_v61, %v821_v54  ;;  %v824_v40 = vmul.f32 %v656_v14, %v656_v14 }
  0xf6   : > { %v606_v9 = vpop.f32.mrf.mxu2 }
  0xf7   : > { %v695_v10 = vpop.f32.mrf.mxu3  ;;  %v607_v16 = vadd.f32 %v1668_v50, %v606_v9 }
  0xf8   : > { %v568_v11 = vpop.f32.mrf.mxu0 }
  0xf9   : > { %v657_v12 = vpop.f32.mrf.mxu1  ;;  %v569_v13 = vadd.f32 %v1668_v50, %v568_v11  ;;  %v1746_v23 = vadd.f32 %v695_v10, %v607_v16  ;;  %v853_v10 = vadd.f32 %v852_v6, %v822_v1  ;;  %v785_v11 = vadd.f32 %v784_v7, %v1725_v59 }
  0xfa   : > { %v832_v6 = vmul.f32 %v1679_v5, %v1679_v5 }
  0xfb   : > { %v1741_v15 = vadd.f32 %v657_v12, %v569_v13  ;;  %v854_v13 = vadd.f32 %v853_v10, %v823_v22  ;;  %v786_v16 = vadd.f32 %v785_v11, %v656_v14  ;;  %v833_v11 = vmul.f32 %v1683_v8, %v1683_v8 }
  0xfd   : > { %v1278_v17 = vpack.c.bf16 %v1741_v15, %v656_v14  ;;  %v787_v59 = vadd.f32 %v786_v16, %v1741_v15 }
  0xfe   : > { %v608_v18 = vpop.f32.mrf.mxu2 }
  0xff   : > { %1338 = vst [vmem:[%s1676_s8 + $0x20] sm:$0xff] %v1278_v17   ;;  %v697_v19 = vpop.f32.mrf.mxu3  ;;  %v609_v25 = vadd.f32 %v1668_v50, %v608_v18  ;;  %v825_v17 = vmul.f32 %v1741_v15, %v1741_v15 }
 0x100   : > { %v571_v20 = vpop.f32.mrf.mxu0 }
 0x101   : > { %v660_v21 = vpop.f32.mrf.mxu1  ;;  %v1749_v26 = vadd.f32 %v697_v19, %v609_v25  ;;  %v572_v28 = vadd.f32 %v1668_v50, %v571_v20 }
 0x103   : > { %v1318_v27 = vpack.c.bf16 %v1749_v26, %v1746_v23  ;;  %v661_v36 = vadd.f32 %v660_v21, %v572_v28 }
 0x105   : > { %1346 = vst [vmem:[%s1676_s8 + $0x60] sm:$0xff] %v1318_v27   ;;  %v855_v27 = vadd.f32 %v854_v13, %v824_v40  ;;  %v826_v28 = vmul.f32 %v661_v36, %v661_v36 }
 0x106   : > { %v611_v30 = vpop.f32.mrf.mxu2 }
 0x107   : > { %v700_v32 = vpop.f32.mrf.mxu3  ;;  %v612_v38 = vadd.f32 %v1668_v50, %v611_v30 }
 0x108   : > { %v573_v33 = vpop.f32.mrf.mxu0 }
 0x109   : > { %v662_v34 = vpop.f32.mrf.mxu1  ;;  %v574_v35 = vadd.f32 %v1668_v50, %v573_v33  ;;  %v1758_v46 = vadd.f32 %v700_v32, %v612_v38  ;;  %v856_v32 = vadd.f32 %v855_v27, %v825_v17  ;;  %v788_v33 = vadd.f32 %v787_v59, %v661_v36 }
 0x10b   : > { %v663_v37 = vadd.f32 %v662_v34, %v574_v35  ;;  %v857_v38 = vadd.f32 %v856_v32, %v826_v28 }
 0x10d   : > { %v1283_v41 = vpack.c.bf16 %v663_v37, %v661_v36  ;;  %v827_v34 = vmul.f32 %v663_v37, %v663_v37 }
 0x10e   : > { %v613_v42 = vpop.f32.mrf.mxu2 }
 0x10f   : > { %1339 = vst [vmem:[%s1676_s8 + $0x28] sm:$0xff] %v1283_v41   ;;  %v702_v43 = vpop.f32.mrf.mxu3  ;;  %v614_v48 = vadd.f32 %v1668_v50, %v613_v42  ;;  %v789_v41 = vadd.f32 %v788_v33, %v663_v37 }
 0x110   : > { %v576_v44 = vpop.f32.mrf.mxu0 }
 0x111   : > { %v665_v45 = vpop.f32.mrf.mxu1  ;;  %v1761_v51 = vadd.f32 %v702_v43, %v614_v48  ;;  %v577_v56 = vadd.f32 %v1668_v50, %v576_v44  ;;  %v858_v44 = vadd.f32 %v857_v38, %v827_v34 }
 0x113   : > { %v1323_v53 = vpack.c.bf16 %v1761_v51, %v1758_v46  ;;  %v666_v39 = vadd.f32 %v665_v45, %v577_v56 }
 0x115   : > { %1347 = vst [vmem:[%s1676_s8 + $0x68] sm:$0xff] %v1323_v53   ;;  %v828_v42 = vmul.f32 %v666_v39, %v666_v39  ;;  %v790_v45 = vadd.f32 %v789_v41, %v666_v39 }
 0x116   : > { %v616_v57 = vpop.f32.mrf.mxu2 }
 0x117   : > { %v705_v60 = vpop.f32.mrf.mxu3  ;;  %v617_v24 = vadd.f32 %v1668_v50, %v616_v57  ;;  %v859_v54 = vadd.f32 %v858_v44, %v828_v42 }
 0x118   : > { %v578_v62 = vpop.f32.mrf.mxu0 }
 0x119   : > { %v667_v63 = vpop.f32.mrf.mxu1  ;;  %v579_v3 = vadd.f32 %v1668_v50, %v578_v62  ;;  %v1786_v21 = vadd.f32 %v705_v60, %v617_v24 }
 0x11b   : > { %v668_v9 = vadd.f32 %v667_v63, %v579_v3 }
 0x11d   : > { %v1288_v12 = vpack.c.bf16 %v668_v9, %v666_v39  ;;  %v829_v15 = vmul.f32 %v668_v9, %v668_v9  ;;  %v791_v55 = vadd.f32 %v790_v45, %v668_v9 }
 0x11e   : > { %v618_v18 = vpop.f32.mrf.mxu2 }
 0x11f   : > { %1340 = vst [vmem:[%s1676_s8 + $0x30] sm:$0xff] %v1288_v12   ;;  %v707_v58 = vpop.f32.mrf.mxu3  ;;  %v619_v25 = vadd.f32 %v1668_v50, %v618_v18  ;;  %v860_v60 = vadd.f32 %v859_v54, %v829_v15  ;;  %v835_v18 = vmul.f32 %v1698_v31, %v1698_v31 }
 0x120   : > { %v581_v19 = vpop.f32.mrf.mxu0 }
 0x121   : > { %v670_v20 = vpop.f32.mrf.mxu1  ;;  %v582_v30 = vadd.f32 %v1668_v50, %v581_v19  ;;  %v1791_v14 = vadd.f32 %v707_v58, %v619_v25  ;;  %v836_v19 = vmul.f32 %v1713_v47, %v1713_v47 }
 0x123   : > { %v1328_v35 = vpack.c.bf16 %v1791_v14, %v1786_v21  ;;  %v671_v43 = vadd.f32 %v670_v20, %v582_v30 }
 0x125   : > { %1348 = vst [vmem:[%s1676_s8 + $0x70] sm:$0xff] %v1328_v35   ;;  %v830_v36 = vmul.f32 %v671_v43, %v671_v43  ;;  %v792_v61 = vadd.f32 %v791_v55, %v671_v43 }
 0x126   : > { %v621_v48 = vpop.f32.mrf.mxu2 }
 0x127   : > { %v710_v52 = vpop.f32.mrf.mxu3  ;;  %v622_v62 = vadd.f32 %v1668_v50, %v621_v48  ;;  %v861_v63 = vadd.f32 %v860_v60, %v830_v36 }
 0x128   : > { %v583_v53 = vpop.f32.mrf.mxu0 }
 0x129   : > { %v584_v56 = vadd.f32 %v1668_v50, %v583_v53  ;;  %v672_v57 = vpop.f32.mrf.mxu1  ;;  %v1806_v24 = vadd.f32 %v710_v52, %v622_v62 }
 0x12b   : > { %v673_v37 = vadd.f32 %v672_v57, %v584_v56 }
 0x12d   : > { %v1293_v0 = vpack.c.bf16 %v673_v37, %v671_v43  ;;  %v793_v1 = vadd.f32 %v792_v61, %v673_v37  ;;  %v831_v3 = vmul.f32 %v673_v37, %v673_v37 }
 0x12e   : > { %v623_v39 = vpop.f32.mrf.mxu2 }
 0x12f   : > { %1341 = vst [vmem:[%s1676_s8 + $0x38] sm:$0xff] %v1293_v0   ;;  %v794_v7 = vadd.f32 %v793_v1, %v1679_v5  ;;  %v862_v22 = vadd.f32 %v861_v63, %v831_v3  ;;  %v712_v9 = vpop.f32.mrf.mxu3  ;;  %v624_v10 = vadd.f32 %v1668_v50, %v623_v39  ;;  %v834_v5 = vmul.f32 %v1695_v29, %v1695_v29 }
 0x131   : > { %v795_v40 = vadd.f32 %v794_v7, %v1683_v8  ;;  %v863_v12 = vadd.f32 %v862_v22, %v832_v6  ;;  %v713_v13 = vadd.f32 %v712_v9, %v624_v10 }
 0x133   : > { %v796_v16 = vadd.f32 %v795_v40, %v1695_v29  ;;  %v864_v17 = vadd.f32 %v863_v12, %v833_v11  ;;  %v1333_v50 = vpack.c.bf16 %v713_v13, %v1806_v24 }
 0x135   : > { %v797_v8 = vadd.f32 %v796_v16, %v1698_v31  ;;  %v865_v58 = vadd.f32 %v864_v17, %v834_v5  ;;  %1349 = vst [vmem:[%s1676_s8 + $0x78] sm:$0xff] %v1333_v50  }
 0x137   : > { %v798_v20 = vadd.f32 %v797_v8, %v1713_v47  ;;  %v866_v29 = vadd.f32 %v865_v58, %v835_v18 }
 0x138   : > { %1435 = shalt.err (!%p1432_p3)
}
 0x139   : > { %s1472_s6 = smov 64   ;;  %s1473_s7 = smov 4   ;;  %v837_v31 = vmul.f32 %v1716_v49, %v1716_v49  ;;  %v799_v47 = vadd.f32 %v798_v20, %v1716_v49  ;;  %v867_v25 = vadd.f32 %v866_v29, %v836_v19  ;;  %v838_v27 = vmul.f32 %v1731_v2, %v1731_v2 }
 0x13a   : > { %1366 = dma.vmem_to_hbm [thread:$0]  (%p1537_p5), %s1816_s14, 2048, %s910_s20, %s891_s22, %s1472_s6, %s1472_s6, %s1473_s7   ;;  %v839_v30 = vmul.f32 %v1734_v4, %v1734_v4  ;;  %v840_v34 = vmul.f32 %v1746_v23, %v1746_v23  ;;  %v841_v49 = vmul.f32 %v1749_v26, %v1749_v26  ;;  %v844_v48 = vmul.f32 %v1786_v21, %v1786_v21 }
 0x13b   : > { %v868_v59 = vadd.f32 %v867_v25, %v837_v31  ;;  %v800_v28 = vadd.f32 %v799_v47, %v1731_v2  ;;  %v842_v2 = vmul.f32 %v1758_v46, %v1758_v46  ;;  %v847_v57 = vmul.f32 %v713_v13, %v713_v13  ;;  %p209_p4 = scmp.lt.s32.totalorder %s1520_s19, 7 }
 0x13c   : > { %vm885_vm0 = vcmask 1040384   ;;  %vm887_vm1 = vcmask 1041408  }
 0x13d   : > { %v801_v32 = vadd.f32 %v800_v28, %v1734_v4  ;;  %v869_v33 = vadd.f32 %v868_v59, %v838_v27  ;;  %v843_v4 = vmul.f32 %v1761_v51, %v1761_v51  ;;  %s1905_s19 = smov (!%p209_p4, %s1520_s19), 7 }
 0x13e   : > { %s1007_s25 = sshll.u32 %s1905_s19, 3 }
 0x13f   : > { %v802_v35 = vadd.f32 %v801_v32, %v1746_v23  ;;  %v870_v38 = vadd.f32 %v869_v33, %v839_v30  ;;  %s212_s10 = scalar_lea.vmem %s1895_s4, %s1007_s25 }
 0x141   : > { %v803_v41 = vadd.f32 %v802_v35, %v1749_v26  ;;  %v871_v42 = vadd.f32 %v870_v38, %v840_v34 }
 0x143   : > { %v804_v43 = vadd.f32 %v803_v41, %v1758_v46  ;;  %v872_v44 = vadd.f32 %v871_v42, %v841_v49  ;;  %v845_v46 = vmul.f32 %v1791_v14, %v1791_v14 }
 0x145   : > { %v805_v45 = vadd.f32 %v804_v43, %v1761_v51  ;;  %v873_v23 = vadd.f32 %v872_v44, %v842_v2  ;;  %v846_v51 = vmul.f32 %v1806_v24, %v1806_v24 }
 0x147   : > { %v806_v15 = vadd.f32 %v805_v45, %v1786_v21  ;;  %v874_v26 = vadd.f32 %v873_v23, %v843_v4 }
 0x149   : > { %v875_v52 = vadd.f32 %v874_v26, %v844_v48  ;;  %v807_v53 = vadd.f32 %v806_v15, %v1791_v14 }
 0x14b   : > { %v876_v54 = vadd.f32 %v875_v52, %v845_v46  ;;  %v808_v55 = vadd.f32 %v807_v53, %v1806_v24 }
 0x14d   : > { %v877_v36 = vadd.f32 %v876_v54, %v846_v51  ;;  %v809_v56 = vadd.f32 %v808_v55, %v713_v13 }
 0x14f   : > { %v810_v60 = vrot.slane %v809_v56, 4  ;;  %v878_v61 = vadd.f32 %v877_v36, %v847_v57 }
 0x151   : > { %v811_v21 = vadd.f32 %v810_v60, %v809_v56  ;;  %v879_v37 = vrot.slane %v878_v61, 4 }
 0x153   : > { %v812_v62 = vrot.slane %v811_v21, 2  ;;  %v880_v63 = vadd.f32 %v879_v37, %v878_v61 }
 0x155   : > { %v813_v0 = vadd.f32 %v812_v62, %v811_v21  ;;  %v881_v1 = vrot.slane %v880_v63, 2 }
 0x157   : > { %v814_v14 = vrot.slane %v813_v0, 1  ;;  %v882_v3 = vadd.f32 %v881_v1, %v880_v63 }
 0x159   : > { %v883_v6 = vrot.slane %v882_v3, 1  ;;  %v815_v7 = vadd.f32 %v814_v14, %v813_v0 }
 0x15b   : > { %v884_v22 = vadd.f32 %v883_v6, %v882_v3 }
 0x15d   : > { %v886_v39 = vsel %vm885_vm0, %v815_v7, %v884_v22 }
 0x15e   : > { %v888_v9 = vsel %vm887_vm1, %v886_v39, 0.0 }
 0x15f   : > { %889 = vst [vmem:[%s212_s10] sm:$0xff] %v888_v9 }
 0x160 PF: > { %p1372_p5 = scmp.ge.s32.totalorder %s1470_s18, 2  ;;  %s927_s11 = sand.u32 1, %s1458_s15  }
 0x161   : > { %s928_s19 = scalar_lea.sflag [#allocation3], %s927_s11 }
 0x162   : > { %p1369_p7 = pnand %p1372_p5, %p1541_p6 }
 0x164   : > { %p1370_p8 = pneg %p1369_p7 }
 0x166   : > { %1453 = dma.done.wait (%p1370_p8), %s928_s19, 2048  }
 0x167   : > { %1455 = vsyncadd (%p1370_p8), %s928_s19, 4294965248  ;;  %p15_p9 = scmp.ge.s32.totalorder %s1524_s21, 10   ;;  %s1898_s15 = smov %s1462_s16 }
 0x168   : > { %s1899_s16 = smov %s1466_s17  ;;  %s1900_s17 = smov %s1535_s24 }
 0x169   : > { %s1901_s18 = smov %s1524_s21  ;;  %17 = sbr.rel (!%p15_p9) target bundleno = 3 (0x3), region = 79 }
 0x16e   :  { %941 = vsyncpa [#allocation3], 1 }
 0x16f   :  { %943 = vsyncpa [#allocation3 + $0x1], 1 }

</bundles_post_ra>
